<compile_context>
chip_gen: v5e
topology: v5e:2x2
jax: 0.10.0
libtpu: 0.0.40
codegen_flags: <defaults>
</compile_context>

<pallas_src>
import functools
import math

import jax
import jax.numpy as jnp
from jax.experimental import pallas as pl
from jax.experimental.pallas import tpu as pltpu


def _prob_params(L_Q, L_K, factor):
    U_part = factor * int(math.ceil(math.log(L_K)))
    u = factor * int(math.ceil(math.log(L_Q)))
    return min(U_part, L_K), min(u, L_Q)


def _prob_attn_kernel(q_ref, k_ref, v_ref, idx_ref, ctx_ref, out_ref, *,
                      scale, mask_flag):
    """Per-(b, h) ProbSparse attention body.

    q_ref   : (1, 1, u, E)    selected (top-u) queries
    k_ref   : (1, 1, L_K, E)  keys
    v_ref   : (1, 1, L_K, D)  values
    idx_ref : (1, 1, u, 1)    original positions of the selected queries (int32)
    ctx_ref : (1, 1, L_Q, D)  initial context (cumsum / mean of V)
    out_ref : (1, 1, u, D)    softmax(scores) @ V for the selected rows
    """
    k = k_ref[0, 0]                       # (L_K, E) -- kept in input dtype (MXU native)
    v = v_ref[0, 0]                       # (L_K, D)
    L_K = k.shape[0]
    L_Q = ctx_ref.shape[2]
    D = v.shape[1]

    # ---- scores for the selected queries ---------------------------------
    # scale folded into q: O(u*E) multiplies instead of O(u*L_K)
    q = q_ref[0, 0]
    q = q * jnp.asarray(scale, dtype=q.dtype)                        # (u, E)
    # contract last dim of q with last dim of k: no in-kernel k.T
    scores = jax.lax.dot_general(
        q, k, dimension_numbers=(((1,), (1,)), ((), ())),
        preferred_element_type=jnp.float32)                          # (u, L_K) f32

    if mask_flag:
        # ProbMask: a selected query originally at row p attends only to keys s <= p.
        col = jax.lax.broadcasted_iota(jnp.int32, scores.shape, 1)   # (u, L_K)
        pos = idx_ref[0, 0]                                          # (u, 1) int32
        scores = jnp.where(col > pos, jnp.float32(-1e30), scores)    # finite fill: no NaNs

    # ---- softmax (f32), 1/denominator deferred past the PV matmul --------
    m = jnp.max(scores, axis=-1, keepdims=True)
    p = jnp.exp(scores - m)
    denom = jnp.sum(p, axis=-1, keepdims=True)                       # (u, 1)

    out = jnp.dot(p.astype(v.dtype), v,
                  preferred_element_type=jnp.float32)                # (u, D) f32
    out = out * pl.reciprocal(denom, approx=True)                    # EUP slot, O(u*D)
    out_ref[0, 0] = out.astype(out_ref.dtype)

    # ---- initial context ---------------------------------------------------
    if mask_flag:
        # context = cumsum(V, axis=-2): chunk-wise lower-triangular matmuls on
        # the MXU with a running carry, so VMEM stays O(chunk^2), not O(L^2).
        chunk = min(L_K, 256)
        carry = jnp.zeros((1, D), jnp.float32)
        start = 0
        while start < L_K:
            c = min(chunk, L_K - start)
            blk = v[start:start + c, :].astype(jnp.float32)          # (c, D)
            r = jax.lax.broadcasted_iota(jnp.int32, (c, c), 0)
            s = jax.lax.broadcasted_iota(jnp.int32, (c, c), 1)
            tri = (s <= r).astype(jnp.float32)
            csum = jnp.dot(tri, blk, preferred_element_type=jnp.float32) + carry
            ctx_ref[0, 0, start:start + c, :] = csum.astype(ctx_ref.dtype)
            carry = csum[c - 1:c, :]
            start += c
    else:
        v_mean = jnp.sum(v.astype(jnp.float32), axis=0, keepdims=True) / L_K
        ctx_ref[0, 0] = jnp.broadcast_to(v_mean, (L_Q, D)).astype(ctx_ref.dtype)


def prob_attention(queries, keys, values, attn_mask=None, *, index_sample=None,
                   sample_key=None, factor=5, scale=None, mask_flag=True,
                   output_attention=False):
    """Pallas equivalent of ProbAttention.forward (eval mode).

    queries: (B, L_Q, H, E), keys: (B, L_K, H, E), values: (B, L_K, H, D).
    Returns (context, None) with context of shape (B, H, L_Q, D), matching the
    PyTorch module's `context.contiguous()`.

    `attn_mask` is accepted for API parity; like the PyTorch module, the causal
    ProbMask is built internally when mask_flag=True and the argument is unused.
    """
    B, L_Q, H, E = queries.shape
    _, L_K, _, D = values.shape
    if mask_flag:
        assert L_Q == L_K, "mask_flag=True requires L_Q == L_V (as in the PyTorch module)"
    scale = float(scale) if scale is not None else 1.0 / math.sqrt(E)

    U_part, u = _prob_params(L_Q, L_K, factor)

    # head-major layout, mirroring torch's .transpose(2, 1)
    Q = jnp.transpose(queries, (0, 2, 1, 3))   # (B, H, L_Q, E)
    K = jnp.transpose(keys,    (0, 2, 1, 3))   # (B, H, L_K, E)
    V = jnp.transpose(values,  (0, 2, 1, 3))   # (B, H, L_K, D)

    # ---- selection stage (plain JAX) --------------------------------------
    # TODO(synk): random key sampling, top-u selection and gather/scatter of the
    # selected rows stay in XLA; they are data-dependent index plumbing with no
    # clean BlockSpec expression, and carry negligible FLOPs vs the kernel.
    if index_sample is None:
        if sample_key is None:
            sample_key = jax.random.PRNGKey(0)
        index_sample = jax.random.randint(sample_key, (L_Q, U_part), 0, L_K)
    K_sample = K[:, :, index_sample, :]                               # (B,H,L_Q,U_part,E)
    Q_K_sample = jnp.einsum('bhle,bhlse->bhls', Q, K_sample)          # (B,H,L_Q,U_part)
    M = Q_K_sample.max(-1) - Q_K_sample.sum(-1) / L_K                 # (B,H,L_Q)
    _, M_top = jax.lax.top_k(M, u)                                    # (B,H,u)
    M_top = M_top.astype(jnp.int32)
    Q_reduce = jnp.take_along_axis(Q, M_top[..., None], axis=2)       # (B,H,u,E)
    m_top_col = M_top[..., None]                                      # (B,H,u,1)

    # ---- Pallas kernel: scores / mask / softmax / PV + initial context ----
    itemsize = jnp.dtype(queries.dtype).itemsize
    block_bytes = itemsize * (u * E + L_K * E + L_K * D + L_Q * D + u * D) + 4 * u
    vmem_limit = int(min(64 * 1024 * 1024,
                         max(16 * 1024 * 1024, 2 * block_bytes + (4 << 20))))

    kernel = functools.partial(_prob_attn_kernel, scale=scale, mask_flag=mask_flag)

    ctx0, out_top = pl.pallas_call(
        kernel,
        out_shape=(
            jax.ShapeDtypeStruct((B, H, L_Q, D), values.dtype),
            jax.ShapeDtypeStruct((B, H, u, D), values.dtype),
        ),
        grid_spec=pltpu.PrefetchScalarGridSpec(
            num_scalar_prefetch=0,
            grid=(B, H),
            in_specs=[
                pl.BlockSpec((1, 1, u, E), lambda b, h: (b, h, 0, 0)),
                pl.BlockSpec((1, 1, L_K, E), lambda b, h: (b, h, 0, 0)),
                pl.BlockSpec((1, 1, L_K, D), lambda b, h: (b, h, 0, 0)),
                pl.BlockSpec((1, 1, u, 1), lambda b, h: (b, h, 0, 0)),
            ],
            out_specs=(
                pl.BlockSpec((1, 1, L_Q, D), lambda b, h: (b, h, 0, 0)),
                pl.BlockSpec((1, 1, u, D), lambda b, h: (b, h, 0, 0)),
            ),
        ),
        compiler_params=pltpu.CompilerParams(
            dimension_semantics=("parallel", "parallel"),
            vmem_limit_bytes=vmem_limit),
    )(Q_reduce, K, V, m_top_col)

    # scatter the attended rows into the initial context, mirroring
    # context_in[arange(B), arange(H), index, :] = attn @ V
    b_idx = jnp.arange(B)[:, None, None]
    h_idx = jnp.arange(H)[None, :, None]
    context = ctx0.at[b_idx, h_idx, M_top, :].set(out_top)

    # TODO(synk): output_attention=True (dense L_V x L_V attention map) is not
    # implemented; the module's default (False) returns None here.
    return context, None


def _reference_prob_attention(queries, keys, values, index_sample, *,
                              factor=5, scale=None, mask_flag=True):
    """Pure-JAX mirror of PyTorch ProbAttention.forward (same sampled indices)."""
    B, L_Q, H, E = queries.shape
    _, L_K, _, D = values.shape
    Q = jnp.transpose(queries, (0, 2, 1, 3))
    K = jnp.transpose(keys, (0, 2, 1, 3))
    V = jnp.transpose(values, (0, 2, 1, 3))
    _, u = _prob_params(L_Q, L_K, factor)
    scale = scale if scale is not None else 1.0 / math.sqrt(E)

    K_sample = K[:, :, index_sample, :]
    Q_K_sample = jnp.einsum('bhle,bhlse->bhls', Q, K_sample)
    M = Q_K_sample.max(-1) - Q_K_sample.sum(-1) / L_K
    _, M_top = jax.lax.top_k(M, u)
    Q_reduce = jnp.take_along_axis(Q, M_top[..., None], axis=2)
    scores = jnp.einsum('bhue,bhke->bhuk', Q_reduce, K) * scale

    if mask_flag:
        col = jnp.arange(L_K)[None, None, None, :]
        scores = jnp.where(col > M_top[..., None], -jnp.inf, scores)
        context = jnp.cumsum(V, axis=-2).astype(values.dtype)
    else:
        context = jnp.broadcast_to(jnp.mean(V, axis=-2, keepdims=True),
                                   (B, H, L_Q, D)).astype(values.dtype)

    attn = jax.nn.softmax(scores, axis=-1)
    out_top = jnp.einsum('bhuk,bhkd->bhud', attn, V)
    b_idx = jnp.arange(B)[:, None, None]
    h_idx = jnp.arange(H)[None, :, None]
    return context.at[b_idx, h_idx, M_top, :].set(out_top.astype(values.dtype))


if __name__ == "__main__":
    # Full f32 matmul precision so the XLA reference matches the kernel's
    # f32-accumulating MXU dots.
    jax.config.update("jax_default_matmul_precision", "highest")

    B, L, H, E = 2, 32, 4, 32     # queries/keys: (B, L, H, E)
    D = 32                        # values: (B, L, H, D)
    factor = 5

    root = jax.random.PRNGKey(0)
    kq, kk, kv, ks = jax.random.split(root, 4)
    queries = jax.random.normal(kq, (B, L, H, E), dtype=jnp.float32)
    keys = jax.random.normal(kk, (B, L, H, E), dtype=jnp.float32)
    values = jax.random.normal(kv, (B, L, H, D), dtype=jnp.float32)

    # deterministic replacement for torch.randint's key sampling
    U_part, u = _prob_params(L, L, factor)
    index_sample = jax.random.randint(ks, (L, U_part), 0, L)

    context, attn = prob_attention(queries, keys, values, None,
                                   index_sample=index_sample, factor=factor,
                                   mask_flag=True)
    context = jax.block_until_ready(context)
    assert context.shape == (B, H, L, D)
    assert attn is None

    ref = _reference_prob_attention(queries, keys, values, index_sample,
                                    factor=factor, mask_flag=True)
    max_err = float(jnp.max(jnp.abs(context - ref)))
    # tolerance covers the in-kernel approximate reciprocal (EUP, ~1e-3 rel)
    assert jnp.allclose(context, ref, atol=1e-2, rtol=1e-2), \
        f"mismatch vs reference, max abs err = {max_err}"
    print("KERNEL_OK")
</pallas_src>

<mosaic_0001>
module attributes {stable_mosaic.version = 11 : i64} {
  func.func @_prob_attn_kernel(%arg0: i32, %arg1: i32, %arg2: memref<1x1x20x32xf32, #tpu.memory_space<vmem>>, %arg3: memref<1x1x32x32xf32, #tpu.memory_space<vmem>>, %arg4: memref<1x1x32x32xf32, #tpu.memory_space<vmem>>, %arg5: memref<1x1x20x1xi32, #tpu.memory_space<vmem>>, %arg6: memref<1x1x32x32xf32, #tpu.memory_space<vmem>>, %arg7: memref<1x1x20x32xf32, #tpu.memory_space<vmem>>) attributes {dimension_semantics = [#tpu.dimension_semantics<parallel>, #tpu.dimension_semantics<parallel>], iteration_bounds = array<i64: 2, 4>, scalar_prefetch = 0 : i64, scratch_operands = 0 : i64, tpu.core_type = #tpu.core_type<tc>, window_params = [{transform_indices = @transform_0, window_bounds = array<i64: 1, 1, 20, 32>}, {transform_indices = @transform_1, window_bounds = array<i64: 1, 1, 32, 32>}, {transform_indices = @transform_2, window_bounds = array<i64: 1, 1, 32, 32>}, {transform_indices = @transform_3, window_bounds = array<i64: 1, 1, 20, 1>}, {transform_indices = @transform_4, window_bounds = array<i64: 1, 1, 32, 32>}, {transform_indices = @transform_5, window_bounds = array<i64: 1, 1, 20, 32>}]} {
    %c0 = arith.constant 0 : index
    %c0_0 = arith.constant 0 : index
    %c0_1 = arith.constant 0 : index
    %c0_2 = arith.constant 0 : index
    %0 = vector.load %arg3[%c0, %c0_0, %c0_1, %c0_2] : memref<1x1x32x32xf32, #tpu.memory_space<vmem>>, vector<1x1x32x32xf32>
    %1 = vector.shape_cast %0 : vector<1x1x32x32xf32> to vector<32x32xf32>
    %c0_3 = arith.constant 0 : index
    %c0_4 = arith.constant 0 : index
    %c0_5 = arith.constant 0 : index
    %c0_6 = arith.constant 0 : index
    %2 = vector.load %arg4[%c0_3, %c0_4, %c0_5, %c0_6] : memref<1x1x32x32xf32, #tpu.memory_space<vmem>>, vector<1x1x32x32xf32>
    %3 = vector.shape_cast %2 : vector<1x1x32x32xf32> to vector<32x32xf32>
    %c0_7 = arith.constant 0 : index
    %c0_8 = arith.constant 0 : index
    %c0_9 = arith.constant 0 : index
    %c0_10 = arith.constant 0 : index
    %4 = vector.load %arg2[%c0_7, %c0_8, %c0_9, %c0_10] : memref<1x1x20x32xf32, #tpu.memory_space<vmem>>, vector<1x1x20x32xf32>
    %5 = vector.shape_cast %4 : vector<1x1x20x32xf32> to vector<20x32xf32>
    %cst = arith.constant 0.176776692 : f32
    %6 = vector.broadcast %cst : f32 to vector<20x32xf32>
    %7 = arith.mulf %5, %6 : vector<20x32xf32>
    %cst_11 = arith.constant dense<0.000000e+00> : vector<20x32xf32>
    %8 = tpu.matmul %7, %1, %cst_11 {dimension_numbers = #tpu.dot_dimension_numbers<[1], [1], [0], [0], [0, 0, 1, 0], [], []>, precision = #tpu.contract_precision<fp32>} : vector<20x32xf32>, vector<32x32xf32>, vector<20x32xf32> -> vector<20x32xf32>
    %9 = tpu.iota {dimensions = array<i32: 1>} : vector<20x32xi32>
    %c0_12 = arith.constant 0 : index
    %c0_13 = arith.constant 0 : index
    %c0_14 = arith.constant 0 : index
    %c0_15 = arith.constant 0 : index
    %10 = vector.load %arg5[%c0_12, %c0_13, %c0_14, %c0_15] : memref<1x1x20x1xi32, #tpu.memory_space<vmem>>, vector<1x1x20x1xi32>
    %11 = vector.shape_cast %10 : vector<1x1x20x1xi32> to vector<20x1xi32>
    %12 = vector.broadcast %11 : vector<20x1xi32> to vector<20x32xi32>
    %13 = arith.cmpi sgt, %9, %12 : vector<20x32xi32>
    %cst_16 = arith.constant -1.000000e+30 : f32
    %14 = vector.broadcast %cst_16 : f32 to vector<20x32xf32>
    %15 = arith.select %13, %14, %8 : vector<20x32xi1>, vector<20x32xf32>
    %cst_17 = arith.constant dense<0xFF800000> : vector<20xf32>
    %16 = vector.multi_reduction <maximumf>, %15, %cst_17 [1] : vector<20x32xf32> to vector<20xf32>
    %17 = vector.shape_cast %16 : vector<20xf32> to vector<20x1xf32>
    %18 = vector.broadcast %17 : vector<20x1xf32> to vector<20x32xf32>
    %19 = arith.subf %15, %18 : vector<20x32xf32>
    %20 = math.exp %19 : vector<20x32xf32>
    %cst_18 = arith.constant dense<0.000000e+00> : vector<20xf32>
    %21 = vector.multi_reduction <add>, %20, %cst_18 [1] : vector<20x32xf32> to vector<20xf32>
    %22 = vector.shape_cast %21 : vector<20xf32> to vector<20x1xf32>
    %cst_19 = arith.constant dense<0.000000e+00> : vector<20x32xf32>
    %23 = tpu.matmul %20, %3, %cst_19 {dimension_numbers = #tpu.dot_dimension_numbers<[1], [0], [0], [1], [0, 0, 1, 1], [], []>, precision = #tpu.contract_precision<fp32>} : vector<20x32xf32>, vector<32x32xf32>, vector<20x32xf32> -> vector<20x32xf32>
    %24 = tpu.reciprocal %22 {approx = true} : vector<20x1xf32> -> vector<20x1xf32>
    %25 = vector.broadcast %24 : vector<20x1xf32> to vector<20x32xf32>
    %26 = arith.mulf %23, %25 : vector<20x32xf32>
    %c0_20 = arith.constant 0 : index
    %c0_21 = arith.constant 0 : index
    %c0_22 = arith.constant 0 : index
    %c0_23 = arith.constant 0 : index
    %27 = vector.load %arg7[%c0_20, %c0_21, %c0_22, %c0_23] : memref<1x1x20x32xf32, #tpu.memory_space<vmem>>, vector<1x1x20x32xf32>
    %28 = vector.shape_cast %27 : vector<1x1x20x32xf32> to vector<20x32xf32>
    %29 = vector.shape_cast %26 : vector<20x32xf32> to vector<1x1x20x32xf32>
    tpu.vector_store %arg7[%c0_20, %c0_21, %c0_22, %c0_23], %29 {strides = array<i32>} : memref<1x1x20x32xf32, #tpu.memory_space<vmem>>, vector<1x1x20x32xf32>,
    %cst_24 = arith.constant 0.000000e+00 : f32
    %30 = vector.broadcast %cst_24 : f32 to vector<1x32xf32>
    %31 = tpu.iota {dimensions = array<i32: 0>} : vector<32x32xi32>
    %32 = tpu.iota {dimensions = array<i32: 1>} : vector<32x32xi32>
    %33 = arith.cmpi sle, %32, %31 : vector<32x32xi32>
    %34 = arith.extui %33 : vector<32x32xi1> to vector<32x32xi32>
    %35 = arith.sitofp %34 : vector<32x32xi32> to vector<32x32xf32>
    %cst_25 = arith.constant dense<0.000000e+00> : vector<32x32xf32>
    %36 = tpu.matmul %35, %3, %cst_25 {dimension_numbers = #tpu.dot_dimension_numbers<[1], [0], [0], [1], [0, 0, 1, 1], [], []>, precision = #tpu.contract_precision<fp32>} : vector<32x32xf32>, vector<32x32xf32>, vector<32x32xf32> -> vector<32x32xf32>
    %37 = vector.broadcast %30 : vector<1x32xf32> to vector<32x32xf32>
    %38 = arith.addf %36, %37 : vector<32x32xf32>
    %c0_26 = arith.constant 0 : index
    %c0_27 = arith.constant 0 : index
    %c0_28 = arith.constant 0 : index
    %c0_29 = arith.constant 0 : index
    %39 = vector.load %arg6[%c0_26, %c0_27, %c0_28, %c0_29] : memref<1x1x32x32xf32, #tpu.memory_space<vmem>>, vector<1x1x32x32xf32>
    %40 = vector.shape_cast %39 : vector<1x1x32x32xf32> to vector<32x32xf32>
    %41 = vector.shape_cast %38 : vector<32x32xf32> to vector<1x1x32x32xf32>
    tpu.vector_store %arg6[%c0_26, %c0_27, %c0_28, %c0_29], %41 {strides = array<i32>} : memref<1x1x32x32xf32, #tpu.memory_space<vmem>>, vector<1x1x32x32xf32>,
    return
  }
  func.func @transform_0(%arg0: i32, %arg1: i32) -> (i32, i32, i32, i32) {
    %c0_i32 = arith.constant 0 : i32
    %c0_i32_0 = arith.constant 0 : i32
    %c0_i32_1 = arith.constant 0 : i32
    return %arg0, %arg1, %c0_i32, %c0_i32_0 : i32, i32, i32, i32
  }
  func.func @transform_1(%arg0: i32, %arg1: i32) -> (i32, i32, i32, i32) {
    %c0_i32 = arith.constant 0 : i32
    %c0_i32_0 = arith.constant 0 : i32
    %c0_i32_1 = arith.constant 0 : i32
    return %arg0, %arg1, %c0_i32, %c0_i32_0 : i32, i32, i32, i32
  }
  func.func @transform_2(%arg0: i32, %arg1: i32) -> (i32, i32, i32, i32) {
    %c0_i32 = arith.constant 0 : i32
    %c0_i32_0 = arith.constant 0 : i32
    %c0_i32_1 = arith.constant 0 : i32
    return %arg0, %arg1, %c0_i32, %c0_i32_0 : i32, i32, i32, i32
  }
  func.func @transform_3(%arg0: i32, %arg1: i32) -> (i32, i32, i32, i32) {
    %c0_i32 = arith.constant 0 : i32
    %c0_i32_0 = arith.constant 0 : i32
    %c0_i32_1 = arith.constant 0 : i32
    return %arg0, %arg1, %c0_i32, %c0_i32_0 : i32, i32, i32, i32
  }
  func.func @transform_4(%arg0: i32, %arg1: i32) -> (i32, i32, i32, i32) {
    %c0_i32 = arith.constant 0 : i32
    %c0_i32_0 = arith.constant 0 : i32
    %c0_i32_1 = arith.constant 0 : i32
    return %arg0, %arg1, %c0_i32, %c0_i32_0 : i32, i32, i32, i32
  }
  func.func @transform_5(%arg0: i32, %arg1: i32) -> (i32, i32, i32, i32) {
    %c0_i32 = arith.constant 0 : i32
    %c0_i32_0 = arith.constant 0 : i32
    %c0_i32_1 = arith.constant 0 : i32
    return %arg0, %arg1, %c0_i32, %c0_i32_0 : i32, i32, i32, i32
  }
}

</mosaic_0001>

<bundles_post_ra>
// kernel: tpu_custom_call.1
= control target key start
LH: loop header
LB: loop body
LE: loop exit
PB: predicated region body
PF: predicated region fallthrough
CT: control target
= control target key end

     0   :  { %11 = vsyncpa [#allocation3], 0  ;;  %s2131_s0 = inlined_call_operand.vmem [shape: f32[2,4,20,32], index: 0, kind: input, shape index: {}]   ;;  %s2132_s1 = inlined_call_operand.vmem [shape: f32[2,4,32,32], index: 1, kind: input, shape index: {}]   ;;  %s2133_s2 = inlined_call_operand.vmem [shape: f32[2,4,32,32], index: 2, kind: input, shape index: {}]   ;;  %s2134_s3 = inlined_call_operand.vmem [shape: s32[2,4,20,1], index: 3, kind: input, shape index: {}]   ;;  %s2135_s4 = inlined_call_operand.hbm [shape: f32[2,4,32,32], index: 4, kind: output, shape index: {0}]   ;;  %s2136_s5 = inlined_call_operand.vmem [shape: f32[2,4,20,32], index: 5, kind: output, shape index: {1}]  }
   0x1   :  { %13 = vsyncpa [#allocation3 + $0x1], 0  ;;  %s1768_s18 = smov 0   ;;  %s1770_s19 = smov 0  }
   0x2   :  { %s1772_s20 = smov 0   ;;  %s1774_s21 = smov 0  }
   0x3   :  { %s1776_s22 = smov 0   ;;  %s1778_s23 = smov 0  }
   0x4   :  { %s1780_s24 = smov 0   ;;  %s1782_s25 = smov 0  }
   0x5 LB: > { %s1502_s26 = sadd.s32 4294967295, %s1732_s25   ;;  %s1503_s27 = sadd.s32 4294967294, %s1732_s25   ;;  %s1732_s25 = sphi %s1782_s25, %s19_s25   ;;  %s1728_s24 = sphi %s1780_s24, %s2148_s24   ;;  %s1724_s23 = sphi %s1778_s23, %s2147_s23   ;;  %s1720_s22 = sphi %s1776_s22, %s2146_s22   ;;  %s1716_s21 = sphi %s1774_s21, %s2145_s21   ;;  %s1712_s20 = sphi %s1772_s20, %s2144_s20   ;;  %s1708_s19 = sphi %s1770_s19, %s2143_s19   ;;  %s1704_s18 = sphi %s1768_s18, %s2142_s18  }
   0x6   : > { %s28_s28 = sadd.s32 1, %s1724_s23  ;;  %s31_s29 = sadd.s32 1, %s1728_s24 }
   0x7   : > { %p29_p0 = scmp.ge.s32.totalorder %s28_s28, 4  ;;  %p162_p1 = scmp.ne.s32.totalorder %s1712_s20, %s1708_s19 }
   0x8   : > { %p163_p2 = scmp.eq.s32.totalorder %s1502_s26, 7  ;;  %p168_p5 = scmp.ne.s32.totalorder %s1708_s19, %s1704_s18 }
   0x9   : > { %s2150_s28 = smov (%p29_p0, %s28_s28), 0  ;;  %s2152_s29 = smov (!%p29_p0, %s31_s29), %s1728_s24 }
   0xa   : > { %s148_s30 = ssub.s32 %s1724_s23, %s2150_s28  ;;  %p1819_p3 = por %p163_p2, %p162_p1 }
   0xb   : > { %p33_p4 = scmp.ge.s32.totalorder %s2152_s29, 2  ;;  %p169_p6 = scmp.eq.s32.totalorder %s1503_s27, 7 }
   0xc   : > { %p1506_p7 = scmp.ge.s32.totalorder %s1732_s25, 1  ;;  %p263_p9 = scmp.lt.s32.totalorder %s1732_s25, 9 }
   0xd   : > { %s2154_s29 = smov (%p33_p4, %s2152_s29), 0  ;;  %p1828_p8 = por %p169_p6, %p168_p5 }
   0xe   : > { %2139 = sst [smem:[#allocation5_spill]] %s2154_s29  ;;  %s147_s8 = ssub.s32 %s1728_s24, %s2154_s29 }
   0xf   : > { %s152_s9 = sadd.s32 1, %s1712_s20  ;;  %s149_s10 = sor.u32 %s148_s30, %s147_s8 }
  0x10   : > { %p264_p10 = pnand %p1506_p7, %p263_p9  ;;  %p150_p11 = scmp.eq.s32.totalorder %s149_s10, 0 }
  0x11   : > { %p331_p12 = scmp.lt.s32.totalorder (!%p264_p10), %s1720_s22, 1  ;;  %p333_p13 = scmp.lt.s32.totalorder (!%p264_p10), %s1716_s21, 3 }
  0x12   : > { %s1837_s11 = scalar_select %p150_p11, %s1712_s20, %s152_s9  }
  0x13   : > { %267 = sbr.rel (%p264_p10) target bundleno = 566 (0x236), region = 36 }
  0x18   : > { %s332_s12 = scalar_select %p331_p12, %s1720_s22, 1  ;;  %vm390_vm0 = vcmask 261120   ;;  %v1734_v49 = vmov 0   ;;  %vm685_vm4 = vcmask 257024  }
  0x19   : > { %s334_s13 = scalar_select %p333_p13, %s1716_s21, 3  ;;  %1624 = vset.pattern.permute.xlu0 %v1734_v49  ;;  %1625 = vset.pattern.permute.xlu1 %v1734_v49 }
  0x1a   : > { %s1510_s14 = sshll.u32 %s332_s12, 4  ;;  %s1548_s15 = smul.u32 12, %s332_s12 }
  0x1b   : > { %s1509_s16 = sshll.u32 %s334_s13, 2  ;;  %s1547_s17 = smul.u32 3, %s334_s13 }
  0x1c   : > { %s1843_s26 = sadd.s32 %s1510_s14, %s1509_s16 }
  0x1d   : > { %s1511_s27 = sshll.u32 %s1843_s26, 3  ;;  %s337_s30 = sadd.s32 %s1548_s15, %s1547_s17 }
  0x1e   : > { %s348_s10 = scalar_lea.vmem %s2132_s1, %s1511_s27  ;;  %s1851_s29 = sshll.u32 %s337_s30, 3 }
  0x1f   : > { %v379_v0 = vld [vmem:[%s348_s10 + $0x18] sm:$0xff]  ;;  %v378_v1 = vld [vmem:[%s348_s10 + $0x10] sm:$0xff]  ;;  %v377_v4 = vld [vmem:[%s348_s10 + $0x8] sm:$0xff]  ;;  %s339_s14 = scalar_lea.vmem %s2131_s0, %s1851_s29  ;;  %s366_s17 = scalar_lea.vmem %s2134_s3, %s1851_s29 }
  0x20   : > { %v410_v2 = vsel %vm390_vm0, %v379_v0, 0  ;;  %v407_v3 = vsel %vm390_vm0, %v378_v1, 0  ;;  %v376_v5 = vld [vmem:[%s348_s10] sm:$0xff]  ;;  %v404_v8 = vsel %vm390_vm0, %v377_v4, 0  ;;  %v385_v11 = vld [vmem:[%s339_s14 + $0x8] sm:$0xff]  ;;  %s357_s9 = scalar_lea.vmem %s2133_s2, %s1511_s27  ;;  %s375_s10 = scalar_lea.vmem %s2136_s5, %s1851_s29 }
  0x21   : > { %v1859_v6 = vand.u32 4294901760, %v410_v2  ;;  %v1861_v7 = vand.u32 4294901760, %v407_v3  ;;  %v401_v9 = vsel %vm390_vm0, %v376_v5, 0  ;;  %v384_v10 = vld [vmem:[%s339_s14] sm:$0xff]  ;;  %v1865_v12 = vand.u32 4294901760, %v404_v8  ;;  %v662_v54 = vld [vmem:[%s366_s17 + $0x8] sm:$0xff] }
  0x22   : > { %v1867_v13 = vand.u32 4294901760, %v401_v9  ;;  %v387_v14 = vmul.f32 0.17677669, %v384_v10  ;;  %v388_v15 = vmul.f32 0.17677669, %v385_v11  ;;  %v661_v48 = vld [vmem:[%s366_s17] sm:$0xff]  ;;  %v659_v5 = vlaneseq }
  0x23   : > { %425 = vmatpush.xpose.msra.mxu0 %v1859_v6  ;;  %v470_v16 = vsub.f32 %v410_v2, %v1859_v6  ;;  %559 = vmatpush.xpose.msra.mxu3 %v1859_v6  ;;  %v476_v17 = vsub.f32 %v407_v3, %v1861_v7  ;;  %v482_v18 = vsub.f32 %v404_v8, %v1865_v12  ;;  %v386_v21 = vld [vmem:[%s339_s14 + $0x10] sm:$0xf]  ;;  %s317_s29 = sand.u32 1, %s1708_s19   ;;  %s1534_s14 = sshll.u32 %s1716_s21, 2 }
  0x24   : > { %v392_v19 = vsel %vm390_vm0, %v387_v14, 0  ;;  %v395_v20 = vsel %vm390_vm0, %v388_v15, 0  ;;  %v488_v25 = vsub.f32 %v401_v9, %v1867_v13  ;;  %v389_v31 = vmul.f32 0.17677669, %v386_v21  ;;  %665 = vperm.xlu0 %1624, %v661_v48   ;;  %v663_v52 = vld [vmem:[%s366_s17 + $0x10] sm:$0xf] }
  0x25   : > { %520 = vmatpush.xpose.msra.mxu2 %v470_v16  ;;  %v471_v22 = vand.u32 4294901760, %v470_v16  ;;  %v477_v23 = vand.u32 4294901760, %v476_v17  ;;  %v1876_v24 = vand.u32 4294901760, %v392_v19  ;;  %v483_v26 = vand.u32 4294901760, %v482_v18  ;;  %671 = vperm.xlu1 %1625, %v663_v52   ;;  %s1507_s12 = sshll.u32 %s317_s29, 5  ;;  %s1535_s15 = sshll.u32 %s1720_s22, 4 }
  0x26   : > { %v1879_v27 = vand.u32 4294901760, %v395_v20  ;;  %v489_v34 = vand.u32 4294901760, %v488_v25  ;;  %v398_v39 = vsel %vm390_vm0, %v389_v31, 0  ;;  %v1909_v11 = vand.u32 127, %v659_v5  ;;  %s2075_s13 = scalar_lea.vmem [#allocation2], %s1507_s12  ;;  %s1304_s16 = sadd.s32 %s1535_s15, %s1534_s14 }
  0x27   : > { %427 = vmatpush.xpose.msra.mxu0 %v1861_v7  ;;  %v472_v28 = vsub.f32 %v470_v16, %v471_v22  ;;  %561 = vmatpush.xpose.msra.mxu3 %v1861_v7  ;;  %v478_v29 = vsub.f32 %v476_v17, %v477_v23  ;;  %v433_v30 = vsub.f32 %v392_v19, %v1876_v24  ;;  %v448_v42 = vand.u32 4294901760, %v398_v39  ;;  %s1536_s17 = sshll.u32 %s1304_s16, 3  ;;  %s1307_s8 = sshll.u32 %s2075_s13, 4  ;;  %s1308_s8 = int_to_ptr.vmem [resolvable:$true] %s1307_s8 }
  0x28   : > { %v441_v35 = vsub.f32 %v395_v20, %v1879_v27  ;;  %v484_v38 = vsub.f32 %v482_v18, %v483_v26  ;;  %v490_v44 = vsub.f32 %v488_v25, %v489_v34  ;;  %s1306_s30 = scalar_lea.hbm %s2135_s4, %s1536_s17  ;;  %s1284_s26 = scalar_lea.sflag [#allocation3], %s317_s29 }
  0x29   : > { %523 = vmatpush.xpose.msra.mxu2 %v476_v17  ;;  %v473_v32 = vand.u32 4294901760, %v472_v28  ;;  %v434_v33 = vand.u32 4294901760, %v433_v30  ;;  %v479_v36 = vand.u32 4294901760, %v478_v29  ;;  %v449_v46 = vsub.f32 %v398_v39, %v448_v42  ;;  %s1658_s15 = scalar_lea.hbm %s2135_s4, 256 }
  0x2a   : > { %v442_v41 = vand.u32 4294901760, %v441_v35  ;;  %v485_v43 = vand.u32 4294901760, %v484_v38  ;;  %v491_v47 = vand.u32 4294901760, %v490_v44  ;;  %v382_v38 = vld [vmem:[%s357_s9 + $0x10] sm:$0xff] }
  0x2b   : > { %429 = vmatpush.xpose.msra.mxu0 %v1865_v12  ;;  %474 = vmatpush.xpose.msra.mxu1 %v473_v32  ;;  %v435_v37 = vsub.f32 %v433_v30, %v434_v33  ;;  %v450_v51 = vand.u32 4294901760, %v449_v46 }
  0x2c   : > { %563 = vmatpush.xpose.msra.mxu3 %v1865_v12  ;;  %v443_v45 = vsub.f32 %v441_v35, %v442_v41  ;;  %668 = vperm.xlu0 %1624, %v662_v54  }
  0x2d   : > { %526 = vmatpush.xpose.msra.mxu2 %v482_v18  ;;  %v436_v40 = vand.u32 4294901760, %v435_v37  ;;  %v451_v53 = vsub.f32 %v449_v46, %v450_v51 }
  0x2e   : > { %v444_v50 = vand.u32 4294901760, %v443_v45  ;;  %v380_v45 = vld [vmem:[%s357_s9] sm:$0xff] }
  0x2f   : > { %431 = vmatpush.xpose.msra.mxu0 %v1867_v13  ;;  %480 = vmatpush.xpose.msra.mxu1 %v479_v36  ;;  %v452_v55 = vand.u32 4294901760, %v451_v53  ;;  %v383_v36 = vld [vmem:[%s357_s9 + $0x18] sm:$0xff]  ;;  %v1960_v49 = vand.u32 4294901760, %v380_v45 }
  0x30   : > { %565 = vmatpush.xpose.msra.mxu3 %v1867_v13  ;;  %v1931_v37 = vand.u32 4294901760, %v383_v36 }
  0x31   : > { %529 = vmatpush.xpose.msra.mxu2 %v488_v25  ;;  %v1970_v53 = vsub.f32 %v380_v45, %v1960_v49 }
  0x32   : > { %437 = vmatmul.f32.vlgmr.msra.gmra.mxu0 %v436_v40  ;;  %v1935_v39 = vsub.f32 %v383_v36, %v1931_v37  ;;  %v1937_v40 = vand.u32 4294901760, %v382_v38 }
  0x33   : > { %600 = vmatpush.xpose.msrb.mxu0 %v471_v22  ;;  %486 = vmatpush.xpose.msra.mxu1 %v485_v43 }
  0x34   : > { %1543 = vmatpush.xpose.msrb.mxu3 %v1859_v6  ;;  %532 = vmatmul.f32.vlgmr.msra.gmra.mxu2 %v433_v30  ;;  %v1944_v43 = vsub.f32 %v382_v38, %v1937_v40 }
  0x35   : > { %1539 = vmatpush.xpose.msrb.mxu2 %v471_v22  ;;  %569 = vmatmul.f32.vlgmr.msra.gmra.mxu3 %v434_v33 }
  0x37   : > { %604 = vmatpush.xpose.msrb.mxu0 %v477_v23  ;;  %492 = vmatpush.xpose.msra.mxu1 %v491_v47  ;;  %v1954_v47 = vand.u32 4294901760, %v1944_v43 }
  0x38   : > { %1544 = vmatpush.xpose.msrb.mxu3 %v1861_v7 }
  0x39   : > { %1540 = vmatpush.xpose.msrb.mxu2 %v477_v23 }
  0x3a   : > { %445 = vmatmul.f32.gmra.mxu0 %v444_v50  ;;  %494 = vmatmul.f32.vlgmr.msra.gmra.mxu1 %v1876_v24 }
  0x3b   : > { %639 = vmatpush.xpose.msrb.mxu1 %v1859_v6  ;;  %608 = vmatpush.xpose.msrb.mxu0 %v483_v26 }
  0x3c   : > { %1545 = vmatpush.xpose.msrb.mxu3 %v1865_v12  ;;  %537 = vmatmul.f32.gmra.mxu2 %v441_v35 }
  0x3d   : > { %575 = vmatmul.f32.gmra.mxu3 %v442_v41  ;;  %1541 = vmatpush.xpose.msrb.mxu2 %v483_v26  ;;  %v381_v41 = vld [vmem:[%s357_s9 + $0x8] sm:$0xff]  ;;  %s1309_s9 = sshll.u32 %s1306_s30, 4  ;;  %s1310_s9 = int_to_ptr.hbm [resolvable:$true] %s1309_s9 }
  0x3e   : > { %v1948_v44 = vand.u32 4294901760, %v381_v41  ;;  %s1652_s27 = sshra.s32 %s1310_s9, 4  ;;  %s1653_s27 = int_to_ptr.hbm [resolvable:$true] %s1652_s27 }
  0x3f   : > { %641 = vmatpush.xpose.msrb.mxu1 %v1861_v7  ;;  %612 = vmatpush.xpose.msrb.mxu0 %v489_v34  ;;  %p1659_p4 = scmp.lt.s32.totalorder %s1653_s27, %s2135_s4 }
  0x40   : > { %1546 = vmatpush.xpose.msrb.mxu3 %v1867_v13  ;;  %v1957_v48 = vsub.f32 %v381_v41, %v1948_v44 }
  0x41   : > { %1542 = vmatpush.xpose.msrb.mxu2 %v489_v34 }
  0x42   : > { %453 = vmatmul.f32.gmra.mxu0 %v452_v55  ;;  %498 = vmatmul.f32.gmra.mxu1 %v1879_v27  ;;  %v1967_v52 = vand.u32 4294901760, %v1957_v48 }
  0x43   : > { %643 = vmatpush.xpose.msrb.mxu1 %v1865_v12  ;;  %824 = vmatpush.msra.mxu0 %v1935_v39 }
  0x44   : > { %542 = vmatmul.f32.gmra.mxu2 %v449_v46  ;;  %v788_v55 = vsub.f32 %v1957_v48, %v1967_v52 }
  0x45   : > { %581 = vmatmul.f32.gmra.mxu3 %v450_v51  ;;  %729 = vmatpush.msra.mxu2 %v1931_v37  ;;  %v782_v51 = vsub.f32 %v1944_v43, %v1954_v47 }
  0x46   : > { %827 = vmatpush.msra.mxu0 %v1944_v43 }
  0x47   : > { %645 = vmatpush.xpose.msrb.mxu1 %v1867_v13  ;;  %731 = vmatpush.msra.mxu2 %v1937_v40  ;;  %v783_v54 = vand.u32 4294901760, %v782_v51 }
  0x48   : > { %830 = vmatpush.msra.mxu0 %v1957_v48 }
  0x49   : > { %733 = vmatpush.msra.mxu2 %v1948_v44 }
  0x4a   : > { %502 = vmatmul.f32.gmra.mxu1 %v448_v42  ;;  %614 = vmatmul.f32.vlgmr.msrb.gmra.mxu0 %v1876_v24 }
  0x4b   : > { %863 = vmatpush.msra.mxu1 %v1931_v37  ;;  %735 = vmatpush.msra.mxu2 %v1960_v49 }
  0x4c   : > { %618 = vmatmul.f32.vlgmr.msrb.gmra.mxu2 %v1879_v27  ;;  %833 = vmatpush.msra.mxu0 %v1970_v53 }
  0x4d   : > { %651 = vmatmul.f32.vlgmr.msrb.gmra.mxu3 %v1879_v27  ;;  %865 = vmatpush.msra.mxu1 %v1937_v40 }
  0x4e   : > { %1014 = vmatpush.msrb.mxu0 %v1931_v37 }
  0x4f   : > { %867 = vmatpush.msra.mxu1 %v1948_v44 }
  0x50   : > { %1016 = vmatpush.msrb.mxu0 %v1937_v40 }
  0x51   : > { %869 = vmatpush.msra.mxu1 %v1960_v49 }
  0x52   : > { %647 = vmatmul.f32.vlgmr.msrb.gmra.mxu1 %v1876_v24  ;;  %1018 = vmatpush.msrb.mxu0 %v1948_v44 }
  0x54   : > { %622 = vmatmul.f32.gmra.mxu2 %v448_v42  ;;  %1020 = vmatpush.msrb.mxu0 %v1960_v49 }
  0x55   : > { %655 = vmatmul.f32.gmra.mxu3 %v448_v42  ;;  %v1941_v42 = vand.u32 4294901760, %v1935_v39 }
  0x57   : > { %v776_v46 = vsub.f32 %v1935_v39, %v1941_v42  ;;  %904 = vmatpush.msrb.mxu2 %v1941_v42 }
  0x59   : > { %v777_v50 = vand.u32 4294901760, %v776_v46  ;;  %908 = vmatpush.msrb.mxu2 %v1954_v47 }
  0x5b   : > { %778 = vmatpush.msra.mxu3 %v777_v50  ;;  %1071 = vmatpush.msrb.mxu1 %v777_v50 }
  0x5c   : > { %912 = vmatpush.msrb.mxu2 %v1967_v52 }
  0x5d   : > { %784 = vmatpush.msra.mxu3 %v783_v54  ;;  %1077 = vmatpush.msrb.mxu1 %v783_v54 }
  0x96   : > { %v666_v6 = vpop.permute.xlu0 %665 }
  0x97   : > { %vm673_vm1 = vcmp.gt.s32.totalorder %v1909_v11, %v666_v6  ;;  %v672_v29 = vpop.permute.xlu1 %671 }
  0x98   : > { %vm675_vm3 = vcmp.gt.s32.totalorder %v1909_v11, %v672_v29 }
  0x9e   : > { %v669_v21 = vpop.permute.xlu0 %668 }
  0x9f   : > { %vm674_vm2 = vcmp.gt.s32.totalorder %v1909_v11, %v669_v21 }
  0xaf   : > { %v438_v56 = vpop.f32.mrf.mxu0 }
  0xb7   : > { %v446_v58 = vpop.f32.mrf.mxu0  ;;  %v495_v59 = vpop.f32.mrf.mxu1 }
  0xb8   : > { %v570_v57 = vpop.f32.mrf.mxu3  ;;  %v533_v60 = vpop.f32.mrf.mxu2  ;;  %v496_v1 = vadd.f32 %v495_v59, %v438_v56  ;;  %v1979_v56 = vand.u32 4294901760, %v1970_v53 }
  0xba   : > { %v534_v7 = vadd.f32 %v533_v60, %v496_v1  ;;  %916 = vmatpush.msrb.mxu2 %v1979_v56 }
  0xbc   : > { %v571_v12 = vadd.f32 %v570_v57, %v534_v7  ;;  %v789_v57 = vand.u32 4294901760, %v788_v55 }
  0xbe   : > { %790 = vmatpush.msra.mxu3 %v789_v57  ;;  %1083 = vmatpush.msrb.mxu1 %v789_v57 }
  0xbf   : > { %v499_v62 = vpop.f32.mrf.mxu1  ;;  %v454_v0 = vpop.f32.mrf.mxu0 }
  0xc0   : > { %v576_v61 = vpop.f32.mrf.mxu3  ;;  %v538_v63 = vpop.f32.mrf.mxu2  ;;  %v500_v3 = vadd.f32 %v499_v62, %v446_v58  ;;  %v794_v58 = vsub.f32 %v1970_v53, %v1979_v56 }
  0xc2   : > { %v539_v9 = vadd.f32 %v538_v63, %v500_v3  ;;  %v795_v59 = vand.u32 4294901760, %v794_v58 }
  0xc4   : > { %v577_v15 = vadd.f32 %v576_v61, %v539_v9  ;;  %796 = vmatpush.msra.mxu3 %v795_v59  ;;  %1089 = vmatpush.msrb.mxu1 %v795_v59 }
  0xc6   : > { %943 = vmatpush.msrb.mxu3 %v1931_v37 }
  0xc7   : > { %v503_v4 = vpop.f32.mrf.mxu1  ;;  %v615_v10 = vpop.f32.mrf.mxu0 }
  0xc8   : > { %v582_v2 = vpop.f32.mrf.mxu3  ;;  %v543_v8 = vpop.f32.mrf.mxu2  ;;  %v616_v13 = vadd.f32 %v615_v10, %v571_v12  ;;  %v504_v16 = vadd.f32 %v503_v4, %v454_v0  ;;  %945 = vmatpush.msrb.mxu3 %v1937_v40 }
  0xca   : > { %v544_v23 = vadd.f32 %v543_v8, %v504_v16  ;;  %947 = vmatpush.msrb.mxu3 %v1948_v44  ;;  %v2001_v8 = vshrl.u32 %v659_v5, 7 }
  0xcc   : > { %v583_v28 = vadd.f32 %v582_v2, %v544_v23  ;;  %949 = vmatpush.msrb.mxu3 %v1960_v49  ;;  %vm977_vm5 = vcmp.le.s32.totalorder %v1909_v11, %v2001_v8  ;;  %v974_v21 = vadd.s32 8, %v2001_v8 }
  0xce   : > { %vm978_vm6 = vcmp.le.s32.totalorder %v1909_v11, %v974_v21 }
  0xcf   : > { %v648_v17 = vpop.f32.mrf.mxu1 }
  0xd0   : > { %v652_v14 = vpop.f32.mrf.mxu3  ;;  %v619_v18 = vpop.f32.mrf.mxu2  ;;  %v649_v19 = vadd.f32 %v648_v17, %v616_v13 }
  0xd1   : > { %v620_v20 = vadd.f32 %v619_v18, %v577_v15 }
  0xd2   : > { %v1912_v22 = vsel %vm673_vm1, -1e+30, %v649_v19  ;;  %v1735_v19 = vmov 0.0  }
  0xd3   : > { %v653_v24 = vadd.f32 %v652_v14, %v620_v20  ;;  %v679_v25 = vsel %vm390_vm0, %v1912_v22, -inf  ;;  %v2017_v20 = vsel %vm977_vm5, 1.0, %v1735_v19 }
  0xd4   : > { %680 = vmax.xlane.f32.xlu1 %v679_v25  ;;  %v990_v25 = vsel %vm390_vm0, %v2017_v20, 0 }
  0xd5   : > { %v1917_v26 = vsel %vm674_vm2, -1e+30, %v653_v24 }
  0xd6   : > { %v682_v27 = vsel %vm390_vm0, %v1917_v26, -inf }
  0xd7   : > { %683 = vmax.xlane.f32.xlu2 %v682_v27 }
  0xd8   : > { %v623_v30 = vpop.f32.mrf.mxu2  ;;  %v656_v31 = vpop.f32.mrf.mxu3 }
  0xd9   : > { %v624_v32 = vadd.f32 %v623_v30, %v583_v28  ;;  %v1022_v30 = vsub.f32 %v990_v25, %v990_v25 }
  0xdb   : > { %v657_v33 = vadd.f32 %v656_v31, %v624_v32  ;;  %v1518_v32 = vsel %vm978_vm6, 1.0, %v1735_v19  ;;  %v1023_v36 = vand.u32 4294901760, %v1022_v30 }
  0xdd   : > { %v1922_v34 = vsel %vm675_vm3, -1e+30, %v657_v33  ;;  %v975_v33 = vadd.s32 16, %v2001_v8 }
  0xde   : > { %v686_v35 = vsel %vm685_vm4, %v1922_v34, -inf }
  0xdf   : > { %687 = vmax.xlane.f32.xlu2 %v686_v35  ;;  %vm979_vm7 = vcmp.le.s32.totalorder %v1909_v11, %v975_v33 }
  0xe0   : > { %v1519_v41 = vsel %vm979_vm7, 1.0, %v1735_v19 }
  0xe1   : > { %v996_v46 = vsel %vm390_vm0, %v1519_v41, 0 }
 0x147   : > { %v681_v60 = vpop.xlane.xlu1 %680 }
 0x148   : > { %v689_v61 = vsub.f32 %v1912_v22, %v681_v60 }
 0x14a   : > { %v692_v62 = vmul.f32 1.442695, %v689_v61  ;;  %v684_v63 = vpop.xlane.xlu2 %683 }
 0x14b   : > { %v690_v0 = vsub.f32 %v1917_v26, %v684_v63 }
 0x14c   : > { %1626 = vpow2.f32 %v692_v62 }
 0x14d   : > { %v694_v1 = vmul.f32 1.442695, %v690_v0 }
 0x14f   : > { %1628 = vpow2.f32 %v694_v1 }
 0x152   : > { %v1627_v2 = vpop.eup %1626  ;;  %v688_v3 = vpop.xlane.xlu2 %687 }
 0x153   : > { %v691_v4 = vsub.f32 %v1922_v34, %v688_v3  ;;  %v698_v6 = vsel %vm390_vm0, %v1627_v2, 0.0  ;;  %v708_v7 = vsel %vm390_vm0, %v1627_v2, 0 }
 0x154   : > { %699 = vadd.xlane.f32.xlu0 %v698_v6  ;;  %v2003_v9 = vand.u32 4294901760, %v708_v7 }
 0x155   : > { %v1629_v10 = vpop.eup %1628  ;;  %v696_v12 = vmul.f32 1.442695, %v691_v4 }
 0x156   : > { %798 = vmatmul.f32.vlgmr.msra.gmra.mxu3 %v2003_v9  ;;  %v701_v13 = vsel %vm390_vm0, %v1629_v10, 0.0  ;;  %v737_v14 = vsub.f32 %v708_v7, %v2003_v9  ;;  %v711_v15 = vsel %vm390_vm0, %v1629_v10, 0 }
 0x157   : > { %1630 = vpow2.f32 %v696_v12  ;;  %702 = vadd.xlane.f32.xlu2 %v701_v13  ;;  %v2009_v16 = vand.u32 4294901760, %v711_v15  ;;  %1165 = vmatpush.msra.mxu3 %v1931_v37 }
 0x158   : > { %836 = vmatmul.f32.vlgmr.msra.gmra.mxu0 %v737_v14  ;;  %v738_v5 = vand.u32 4294901760, %v737_v14 }
 0x159   : > { %v745_v17 = vsub.f32 %v711_v15, %v2009_v16  ;;  %1212 = vmatpush.msra.mxu0 %v1941_v42  ;;  %1167 = vmatpush.msra.mxu3 %v1937_v40  ;;  %v976_v42 = vadd.s32 24, %v2001_v8 }
 0x15a   : > { %873 = vmatmul.f32.vlgmr.msra.gmra.mxu1 %v738_v5  ;;  %v739_v18 = vsub.f32 %v737_v14, %v738_v5 }
 0x15b   : > { %1255 = vmatpush.msra.mxu1 %v1931_v37  ;;  %1216 = vmatpush.msra.mxu0 %v1954_v47  ;;  %v746_v23 = vand.u32 4294901760, %v745_v17  ;;  %v993_v37 = vsel %vm390_vm0, %v1518_v32, 0  ;;  %vm980_vm8 = vcmp.le.s32.totalorder %v1909_v11, %v976_v42 }
 0x15c   : > { %v740_v22 = vand.u32 4294901760, %v739_v18  ;;  %1169 = vmatpush.msra.mxu3 %v1948_v44 }
 0x15d   : > { %v1631_v24 = vpop.eup %1630  ;;  %1257 = vmatpush.msra.mxu1 %v1937_v40  ;;  %1220 = vmatpush.msra.mxu0 %v1967_v52  ;;  %v747_v29 = vsub.f32 %v745_v17, %v746_v23  ;;  %v1030_v40 = vsub.f32 %v993_v37, %v993_v37 }
 0x15e   : > { %741 = vmatmul.f32.vlgmr.msra.gmra.mxu2 %v740_v22  ;;  %802 = vmatmul.f32.gmra.mxu3 %v2009_v16  ;;  %v704_v26 = vsel %vm685_vm4, %v1631_v24, 0.0  ;;  %v714_v27 = vsel %vm390_vm0, %v1631_v24, 0 }
 0x15f   : > { %705 = vadd.xlane.f32.xlu2 %v704_v26  ;;  %v752_v28 = vand.u32 4294901760, %v714_v27  ;;  %1121 = vmatpush.msra.mxu2 %v1935_v39  ;;  %v748_v34 = vand.u32 4294901760, %v747_v29  ;;  %v1024_v39 = vsub.f32 %v1022_v30, %v1023_v36  ;;  %v1031_v45 = vand.u32 4294901760, %v1030_v40 }
 0x160   : > { %841 = vmatmul.f32.gmra.mxu0 %v745_v17  ;;  %1171 = vmatpush.msra.mxu3 %v1960_v49 }
 0x161   : > { %v753_v31 = vsub.f32 %v714_v27, %v752_v28  ;;  %1124 = vmatpush.msra.mxu2 %v1944_v43  ;;  %1259 = vmatpush.msra.mxu1 %v1948_v44  ;;  %v1025_v44 = vand.u32 4294901760, %v1024_v39  ;;  %v1032_v47 = vsub.f32 %v1030_v40, %v1031_v45 }
 0x162   : > { %879 = vmatmul.f32.gmra.mxu1 %v746_v23  ;;  %1224 = vmatpush.msra.mxu0 %v1979_v56 }
 0x163   : > { %1127 = vmatpush.msra.mxu2 %v1957_v48  ;;  %1261 = vmatpush.msra.mxu1 %v1960_v49  ;;  %v754_v35 = vand.u32 4294901760, %v753_v31  ;;  %v1038_v48 = vsub.f32 %v996_v46, %v996_v46  ;;  %v1520_v49 = vsel %vm980_vm8, 1.0, %v1735_v19  ;;  %v1033_v50 = vand.u32 4294901760, %v1032_v47 }
 0x164   : > { %v999_v52 = vsel %vm390_vm0, %v1520_v49, 0 }
 0x165   : > { %1130 = vmatpush.msra.mxu2 %v1970_v53  ;;  %v755_v38 = vsub.f32 %v753_v31, %v754_v35  ;;  %v1039_v51 = vand.u32 4294901760, %v1038_v48  ;;  %v1046_v54 = vsub.f32 %v999_v52, %v999_v52 }
 0x166   : > { %749 = vmatmul.f32.gmra.mxu2 %v748_v34  ;;  %806 = vmatmul.f32.gmra.mxu3 %v752_v28 }
 0x167   : > { %v756_v43 = vand.u32 4294901760, %v755_v38  ;;  %v1040_v53 = vsub.f32 %v1038_v48, %v1039_v51  ;;  %v1047_v55 = vand.u32 4294901760, %v1046_v54 }
 0x168   : > { %846 = vmatmul.f32.gmra.mxu0 %v753_v31 }
 0x169   : > { %v1041_v11 = vand.u32 4294901760, %v1040_v53  ;;  %v1048_v56 = vsub.f32 %v1046_v54, %v1047_v55 }
 0x16a   : > { %885 = vmatmul.f32.gmra.mxu1 %v754_v35 }
 0x16b   : > { %v1049_v57 = vand.u32 4294901760, %v1048_v56 }
 0x16e   : > { %757 = vmatmul.f32.gmra.mxu2 %v756_v43  ;;  %951 = vmatmul.f32.vlgmr.msrb.gmra.mxu3 %v2003_v9 }
 0x170   : > { %1026 = vmatmul.f32.vlgmr.msrb.gmra.mxu0 %v1025_v44 }
 0x172   : > { %1521 = vmatmul.msk.f32.vlgmr.msrb.gmra.mxu1 %vm390_vm0, %v2017_v20 }
 0x176   : > { %918 = vmatmul.f32.vlgmr.msrb.gmra.mxu2 %v2003_v9  ;;  %955 = vmatmul.f32.gmra.mxu3 %v2009_v16 }
 0x178   : > { %1034 = vmatmul.f32.gmra.mxu0 %v1033_v50 }
 0x17a   : > { %1522 = vmatmul.msk.f32.gmra.mxu1 %vm390_vm0, %v1518_v32 }
 0x17e   : > { %922 = vmatmul.f32.gmra.mxu2 %v2009_v16  ;;  %959 = vmatmul.f32.gmra.mxu3 %v752_v28 }
 0x180   : > { %1042 = vmatmul.f32.gmra.mxu0 %v1041_v11 }
 0x182   : > { %1523 = vmatmul.msk.f32.gmra.mxu1 %vm390_vm0, %v1519_v41 }
 0x186   : > { %926 = vmatmul.f32.gmra.mxu2 %v752_v28  ;;  %1175 = vmatmul.f32.vlgmr.msra.gmra.mxu3 %v1023_v36 }
 0x188   : > { %1050 = vmatmul.f32.gmra.mxu0 %v1049_v57 }
 0x18a   : > { %1524 = vmatmul.msk.f32.gmra.mxu1 %vm390_vm0, %v1520_v49 }
 0x18e   : > { %1133 = vmatmul.f32.vlgmr.msra.gmra.mxu2 %v1022_v30  ;;  %1181 = vmatmul.f32.gmra.mxu3 %v1031_v45 }
 0x190   : > { %1525 = vmatmul.msk.f32.vlgmr.msra.gmra.mxu0 %vm390_vm0, %v2017_v20 }
 0x192   : > { %1529 = vmatmul.msk.f32.vlgmr.msra.gmra.mxu1 %vm390_vm0, %v2017_v20 }
 0x196   : > { %1138 = vmatmul.f32.gmra.mxu2 %v1030_v40  ;;  %1187 = vmatmul.f32.gmra.mxu3 %v1039_v51 }
 0x198   : > { %1526 = vmatmul.msk.f32.gmra.mxu0 %vm390_vm0, %v1518_v32 }
 0x19a   : > { %1530 = vmatmul.msk.f32.gmra.mxu1 %vm390_vm0, %v1518_v32 }
 0x19e   : > { %1143 = vmatmul.f32.gmra.mxu2 %v1038_v48  ;;  %1193 = vmatmul.f32.gmra.mxu3 %v1047_v55 }
 0x1a0   : > { %1527 = vmatmul.msk.f32.gmra.mxu0 %vm390_vm0, %v1519_v41 }
 0x1a2   : > { %1531 = vmatmul.msk.f32.gmra.mxu1 %vm390_vm0, %v1519_v41 }
 0x1a6   : > { %1148 = vmatmul.f32.gmra.mxu2 %v1046_v54 }
 0x1a8   : > { %1528 = vmatmul.msk.f32.gmra.mxu0 %vm390_vm0, %v1520_v49 }
 0x1aa   : > { %1532 = vmatmul.msk.f32.gmra.mxu1 %vm390_vm0, %v1520_v49 }
 0x1c7   : > { %v700_v12 = vpop.xlane.xlu0 %699 }
 0x1c8   : > { %1632 = vrcp.f32 %v700_v12 }
 0x1ca   : > { %v703_v19 = vpop.xlane.xlu2 %702 }
 0x1cb   : > { %1634 = vrcp.f32 %v703_v19 }
 0x1ce   : > { %v1633_v23 = vpop.eup %1632 }
 0x1d1   : > { %v1635_v35 = vpop.eup %1634 }
 0x1d2   : > { %v706_v32 = vpop.xlane.xlu2 %705 }
 0x1d3   : > { %1636 = vrcp.f32 %v706_v32 }
 0x1d5   : > { %v837_v58 = vpop.f32.mrf.mxu0 }
 0x1d7   : > { %v874_v59 = vpop.f32.mrf.mxu1 }
 0x1d9   : > { %v799_v60 = vpop.f32.mrf.mxu3  ;;  %v1637_v44 = vpop.eup %1636 }
 0x1dd   : > { %v842_v61 = vpop.f32.mrf.mxu0 }
 0x1df   : > { %v880_v62 = vpop.f32.mrf.mxu1 }
 0x1e1   : > { %v742_v63 = vpop.f32.mrf.mxu2  ;;  %v803_v0 = vpop.f32.mrf.mxu3 }
 0x1e2   : > { %v800_v8 = vadd.f32 %v799_v60, %v742_v63 }
 0x1e4   : > { %v838_v13 = vadd.f32 %v837_v58, %v800_v8 }
 0x1e5   : > { %v847_v1 = vpop.f32.mrf.mxu0 }
 0x1e6   : > { %v875_v5 = vadd.f32 %v874_v59, %v838_v13 }
 0x1e7   : > { %v886_v2 = vpop.f32.mrf.mxu1 }
 0x1e9   : > { %v750_v3 = vpop.f32.mrf.mxu2  ;;  %v807_v4 = vpop.f32.mrf.mxu3 }
 0x1ea   : > { %v804_v16 = vadd.f32 %v803_v0, %v750_v3 }
 0x1ec   : > { %v843_v21 = vadd.f32 %v842_v61, %v804_v16 }
 0x1ed   : > { %v1027_v6 = vpop.f32.mrf.mxu0 }
 0x1ee   : > { %v881_v28 = vadd.f32 %v880_v62, %v843_v21 }
 0x1ef   : > { %v1092_v7 = vpop.f32.mrf.mxu1 }
 0x1f0   : > { %v1093_v48 = vadd.f32 %v1092_v7, %v1027_v6 }
 0x1f1   : > { %v758_v9 = vpop.f32.mrf.mxu2  ;;  %v952_v10 = vpop.f32.mrf.mxu3 }
 0x1f2   : > { %v808_v27 = vadd.f32 %v807_v4, %v758_v9 }
 0x1f4   : > { %v848_v33 = vadd.f32 %v847_v1, %v808_v27 }
 0x1f5   : > { %v1035_v14 = vpop.f32.mrf.mxu0 }
 0x1f6   : > { %v887_v39 = vadd.f32 %v886_v2, %v848_v33 }
 0x1f7   : > { %v1096_v15 = vpop.f32.mrf.mxu1 }
 0x1f8   : > { %v1097_v11 = vadd.f32 %v1096_v15, %v1035_v14 }
 0x1f9   : > { %v919_v17 = vpop.f32.mrf.mxu2  ;;  %v956_v18 = vpop.f32.mrf.mxu3 }
 0x1fa   : > { %v920_v20 = vadd.f32 %v919_v17, %v875_v5 }
 0x1fc   : > { %v953_v22 = vadd.f32 %v952_v10, %v920_v20 }
 0x1fd   : > { %v1043_v24 = vpop.f32.mrf.mxu0 }
 0x1fe   : > { %v966_v25 = vmul.f32 %v1633_v23, %v953_v22 }
 0x1ff   : > { %v1100_v26 = vpop.f32.mrf.mxu1 }
 0x200   : > { %969 = vst.msk [vmem:[%s375_s10] sm:$0xff] %vm390_vm0, %v966_v25  ;;  %v1101_v62 = vadd.f32 %v1100_v26, %v1043_v24 }
 0x201   : > { %v923_v29 = vpop.f32.mrf.mxu2  ;;  %v960_v31 = vpop.f32.mrf.mxu3 }
 0x202   : > { %v924_v30 = vadd.f32 %v923_v29, %v881_v28 }
 0x204   : > { %v957_v34 = vadd.f32 %v956_v18, %v924_v30 }
 0x205   : > { %v1051_v36 = vpop.f32.mrf.mxu0 }
 0x206   : > { %v967_v37 = vmul.f32 %v1635_v35, %v957_v34 }
 0x207   : > { %v1104_v38 = vpop.f32.mrf.mxu1 }
 0x208   : > { %970 = vst.msk [vmem:[%s375_s10 + $0x8] sm:$0xff] %vm390_vm0, %v967_v37  ;;  %v1105_v7 = vadd.f32 %v1104_v38, %v1051_v36 }
 0x209   : > { %v927_v40 = vpop.f32.mrf.mxu2  ;;  %v1176_v42 = vpop.f32.mrf.mxu3 }
 0x20a   : > { %v928_v41 = vadd.f32 %v927_v40, %v887_v39 }
 0x20c   : > { %v961_v43 = vadd.f32 %v960_v31, %v928_v41 }
 0x20d   : > { %v1227_v45 = vpop.f32.mrf.mxu0 }
 0x20e   : > { %v968_v46 = vmul.f32 %v1637_v44, %v961_v43 }
 0x20f   : > { %v1264_v47 = vpop.f32.mrf.mxu1 }
 0x210   : > { %971 = vst.msk [vmem:[%s375_s10 + $0x10] sm:$0xf] %vm685_vm4, %v968_v46  ;;  %s1654_s10 = scalar_lea.hbm %s1653_s27, 32 }
 0x211   : > { %v1134_v49 = vpop.f32.mrf.mxu2  ;;  %v1182_v52 = vpop.f32.mrf.mxu3  ;;  %p1655_p0 = scmp.ne.s32.totalorder %s1653_s27, %s1654_s10  ;;  %p1660_p5 = scmp.lt.s32.totalorder %s1658_s15, %s1654_s10 }
 0x212   : > { %v1135_v50 = vadd.f32 %v1134_v49, %v1093_v48 }
 0x213   : > { %p1656_p1 = pnand %p1655_p0, %p1819_p3  ;;  %p1661_p6 = por %p1660_p5, %p1659_p4 }
 0x214   : > { %v1177_v51 = vadd.f32 %v1176_v42, %v1135_v50 }
 0x215   : > { %v1231_v54 = vpop.f32.mrf.mxu0  ;;  %p1657_p2 = pneg %p1656_p1 }
 0x216   : > { %v1228_v53 = vadd.f32 %v1227_v45, %v1177_v51 }
 0x217   : > { %v1268_v57 = vpop.f32.mrf.mxu1  ;;  %p1662_p7 = pnand %p1661_p6, %p1657_p2 }
 0x218   : > { %v1265_v55 = vadd.f32 %v1264_v47, %v1228_v53 }
 0x219   : > { %v1139_v56 = vpop.f32.mrf.mxu2  ;;  %v1188_v61 = vpop.f32.mrf.mxu3 }
 0x21a   : > { %1279 = vst.msk [vmem:[%s2075_s13] sm:$0xff] %vm390_vm0, %v1265_v55  ;;  %v1140_v58 = vadd.f32 %v1139_v56, %v1097_v11 }
 0x21c   : > { %v1183_v59 = vadd.f32 %v1182_v52, %v1140_v58 }
 0x21d   : > { %v1235_v1 = vpop.f32.mrf.mxu0 }
 0x21e   : > { %v1232_v60 = vadd.f32 %v1231_v54, %v1183_v59 }
 0x21f   : > { %v1272_v3 = vpop.f32.mrf.mxu1 }
 0x220   : > { %v1269_v63 = vadd.f32 %v1268_v57, %v1232_v60 }
 0x221   : > { %v1144_v0 = vpop.f32.mrf.mxu2  ;;  %v1194_v10 = vpop.f32.mrf.mxu3 }
 0x222   : > { %1280 = vst.msk [vmem:[%s2075_s13 + $0x8] sm:$0xff] %vm390_vm0, %v1269_v63  ;;  %v1145_v2 = vadd.f32 %v1144_v0, %v1101_v62 }
 0x224   : > { %v1189_v4 = vadd.f32 %v1188_v61, %v1145_v2 }
 0x225   : > { %v1239_v13 = vpop.f32.mrf.mxu0 }
 0x226   : > { %v1236_v6 = vadd.f32 %v1235_v1, %v1189_v4 }
 0x227   : > { %v1276_v15 = vpop.f32.mrf.mxu1 }
 0x228   : > { %v1273_v8 = vadd.f32 %v1272_v3, %v1236_v6 }
 0x229   : > { %v1149_v9 = vpop.f32.mrf.mxu2 }
 0x22a   : > { %1281 = vst.msk [vmem:[%s2075_s13 + $0x10] sm:$0xff] %vm390_vm0, %v1273_v8  ;;  %v1150_v12 = vadd.f32 %v1149_v9, %v1105_v7 }
 0x22c   : > { %v1195_v14 = vadd.f32 %v1194_v10, %v1150_v12 }
 0x22e   : > { %v1240_v16 = vadd.f32 %v1239_v13, %v1195_v14 }
 0x230   : > { %v1277_v5 = vadd.f32 %v1276_v15, %v1240_v16 }
 0x232   : > { %1282 = vst.msk [vmem:[%s2075_s13 + $0x18] sm:$0xff] %vm390_vm0, %v1277_v5 }
 0x233   : > { %1665 = shalt.err (!%p1662_p7)
}
 0x234   : > { %s1736_s29 = smov 128   ;;  %s1737_s13 = smov 8  }
 0x235   : > { %1549 = dma.vmem_to_hbm [thread:$0]  (%p1819_p3), %s1308_s8, 512, %s1310_s9, %s1284_s26, %s1736_s29, %s1736_s29, %s1737_s13  }
 0x236 PF: > { %p1555_p9 = scmp.ge.s32.totalorder %s1732_s25, 2  ;;  %s1327_s21 = sand.u32 1, %s1704_s18  }
 0x237   : > { %s1328_s22 = scalar_lea.sflag [#allocation3], %s1327_s21 }
 0x238   : > { %p1552_p10 = pnand %p1555_p9, %p1828_p8 }
 0x23a   : > { %p1553_p11 = pneg %p1552_p10 }
 0x23c   : > { %1699 = dma.done.wait (%p1553_p11), %s1328_s22, 512  }
 0x23d   : > { %1701 = vsyncadd (%p1553_p11), %s1328_s22, 4294966784  ;;  %s19_s25 = sadd.s32 1, %s1732_s25   ;;  %s2141_s6 = sld [smem:[#allocation5_spill]] }
 0x23e   : > { %p16_p12 = scmp.ge.s32.totalorder %s19_s25, 10   ;;  %s2142_s18 = smov %s1708_s19 }
 0x23f   : > { %s2143_s19 = smov %s1712_s20  ;;  %s2144_s20 = smov %s1837_s11 }
 0x240   : > { %s2145_s21 = smov %s1724_s23  ;;  %s2146_s22 = smov %s1728_s24 }
 0x241   : > { %s2147_s23 = smov %s2150_s28  ;;  %18 = sbr.rel (!%p16_p12) target bundleno = 5 (0x5), region = 92 }
 0x243   : > { %s2148_s24 = smov %s2141_s6 }
 0x246   :  { %1346 = vsyncpa [#allocation3], 1 }
 0x247   :  { %1348 = vsyncpa [#allocation3 + $0x1], 1 }

</bundles_post_ra>
